<compile_context>
chip_gen: v6e
topology: v6e:2x2x1
jax: 0.10.0
libtpu: 0.0.40
codegen_flags: <defaults>
</compile_context>

<pallas_src>
import functools

import numpy as np
import jax
import jax.numpy as jnp
from jax.experimental import pallas as pl
from jax.experimental.pallas import tpu as pltpu


def _round_up(x: int, m: int) -> int:
    return ((x + m - 1) // m) * m


def _tpu_info():
    try:
        return pltpu.get_tpu_info()
    except Exception:
        return None


def build_pe_table(d_model: int, max_len: int = 500, dtype=jnp.float32) -> jnp.ndarray:
    """Sinusoidal table identical to the PyTorch __init__, stored lane-dense as
    (max_len, d_model).  (The PyTorch buffer is the same data with an extra
    size-1 broadcast dim.)  Assumes even d_model, like the reference module."""
    position = jnp.arange(max_len, dtype=jnp.float32)[:, None]            # (max_len, 1)
    div_term = jnp.exp(
        jnp.arange(0, d_model, 2, dtype=jnp.float32) * (-np.log(10000.0) / d_model)
    )                                                                     # (d/2,)
    angles = position * div_term                                          # (max_len, d/2)
    # interleave: pe[:, 0::2] = sin, pe[:, 1::2] = cos
    pe = jnp.stack([jnp.sin(angles), jnp.cos(angles)], axis=-1).reshape(max_len, -1)
    pe = pe[:, :d_model]
    return pe.astype(dtype)


def _pos_enc_kernel(x_ref, pe_ref, o_ref, *, compute_dtype):
    # x_ref/o_ref: (ts, tb, D); pe_ref: (ts, 1, D).
    # Plain broadcast add over the batch axis: no lane-concat, no wide temporary.
    o_ref[...] = (x_ref[...].astype(compute_dtype)
                  + pe_ref[...].astype(compute_dtype)).astype(o_ref.dtype)


def _compute_dtype(x_dtype, info):
    x_dtype = jnp.dtype(x_dtype)
    if x_dtype == jnp.dtype(jnp.float32):
        return jnp.float32
    # Sub-f32 inputs (e.g. bf16): add natively on chips with a bf16 VPU
    # (v6e / v7x); upcast to f32 only on v5e or when the chip is unknown.
    if info is not None:
        ver = str(getattr(info, "chip_version", "")).lower()
        if "5" in ver:
            return jnp.float32
        return x_dtype
    return jnp.float32


def positional_encoding(x: jnp.ndarray, pe: jnp.ndarray,
                        *,
                        vmem_tile_budget_bytes: int | None = None,
                        vmem_limit_bytes: int | None = None,
                        donate_x: bool = False) -> jnp.ndarray:
    """x: (S, B, D); pe: (max_len, D) or (max_len, 1, D). Returns x + pe[:S].

    donate_x: set True only if the caller actually donates x (jit donate_argnums
    / last use); otherwise XLA inserts a defensive copy and the alias is a loss.
    """
    S, B, D = x.shape
    if pe.ndim == 2:
        pe = pe[:, None, :]
    max_len, one, d_pe = pe.shape
    assert one == 1 and d_pe == D and S <= max_len

    # Keep pe in f32 HBM for bit-parity with the PyTorch f32 buffer (tiny traffic).
    pe = pe.astype(jnp.float32)

    info = _tpu_info()
    vmem_cap = getattr(info, "vmem_capacity_bytes", None) if info is not None else None
    if not vmem_cap:
        vmem_cap = 64 << 20          # conservative: smallest across v5e/v6e/v7x
    vmem_cap = int(vmem_cap)
    if vmem_tile_budget_bytes is None:
        # Big tiles amortize the ~0.35us/step overhead; stay well under physical.
        vmem_tile_budget_bytes = min(56 << 20, vmem_cap - (16 << 20))
    if vmem_limit_bytes is None:
        vmem_limit_bytes = min(96 << 20, vmem_cap - (8 << 20))

    itemsize = jnp.dtype(x.dtype).itemsize
    pe_item = jnp.dtype(pe.dtype).itemsize
    sub = max(8, 32 // itemsize)     # sublane multiple: 8 (f32) / 16 (bf16) / 32 (i8)

    def per_row(tb_):
        # double-buffered x-in + out tiles, plus double-buffered pe rows, per seq row
        return 2 * (2 * tb_ * D * itemsize + D * pe_item)

    # Batch tile: full B when a minimal (sub-row) tile fits the budget; otherwise a
    # multiple of 8 (keeps the (8,128) block constraint and double-buffering legal).
    tb = B
    if per_row(B) * sub > vmem_tile_budget_bytes and B >= 8:
        tb = max(8, min(B, (vmem_tile_budget_bytes // (per_row(1) * sub)) // 8 * 8))

    S_pad = _round_up(S, sub)
    ts = max(sub, (vmem_tile_budget_bytes // per_row(tb)) // sub * sub)
    ts = min(ts, S_pad)

    # v7x only: make sure there are >=4 seq tiles (>=2 pipelined steps per
    # TensorCore) when S is large enough; no forced split on single-TC chips.
    ver = str(getattr(info, "chip_version", "")).lower() if info is not None else ""
    if "7" in ver and S_pad // sub >= 4 and -(-S // ts) < 4:
        ts = max(sub, _round_up(-(-S // 4), sub))

    grid = (pl.cdiv(S, ts), pl.cdiv(B, tb))

    vmem_needed = per_row(tb) * ts + (2 << 20)
    vmem_limit = max(int(vmem_limit_bytes), vmem_needed)
    vmem_limit = min(vmem_limit, max(vmem_needed, vmem_cap - (4 << 20)))

    cost = pl.CostEstimate(
        flops=S * B * D,
        transcendentals=0,
        bytes_accessed=2 * S * B * D * itemsize + S * D * pe_item,
    )

    compute_dtype = _compute_dtype(x.dtype, info)

    out = pl.pallas_call(
        functools.partial(_pos_enc_kernel, compute_dtype=compute_dtype),
        out_shape=jax.ShapeDtypeStruct((S, B, D), x.dtype),
        grid_spec=pltpu.PrefetchScalarGridSpec(
            num_scalar_prefetch=0,
            grid=grid,
            in_specs=[
                pl.BlockSpec((ts, tb, D), lambda i, j: (i, j, 0)),   # x tile
                pl.BlockSpec((ts, 1, D), lambda i, j: (i, 0, 0)),    # matching pe rows
            ],
            out_specs=pl.BlockSpec((ts, tb, D), lambda i, j: (i, j, 0)),
        ),
        compiler_params=pltpu.CompilerParams(
            dimension_semantics=("parallel", "parallel"),
            vmem_limit_bytes=int(vmem_limit),
        ),
        cost_estimate=cost,
        input_output_aliases={0: 0} if donate_x else {},
    )(x, pe)

    return out


if __name__ == "__main__":
    seq_len, batch, d_model = 8, 2, 32
    max_len = 500

    key = jax.random.PRNGKey(0)
    x = jax.random.normal(key, (seq_len, batch, d_model), dtype=jnp.float32)

    pe = build_pe_table(d_model, max_len)            # (max_len, d_model)

    # x is reused below for the reference check, so do NOT donate it.
    out = positional_encoding(x, pe, donate_x=False)
    out = jax.block_until_ready(out)

    # reference check in plain JAX (same broadcast as the PyTorch module)
    ref = x + pe[:seq_len][:, None, :]
    np.testing.assert_allclose(np.asarray(out), np.asarray(ref), rtol=1e-6, atol=1e-6)

    print("KERNEL_OK")
</pallas_src>

<mosaic_0001>
module attributes {stable_mosaic.version = 11 : i64} {
  func.func @_pos_enc_kernel(%arg0: i32, %arg1: i32, %arg2: memref<8x2x32xf32, #tpu.memory_space<vmem>>, %arg3: memref<8x1x32xf32, #tpu.memory_space<vmem>>, %arg4: memref<8x2x32xf32, #tpu.memory_space<vmem>>) attributes {dimension_semantics = [#tpu.dimension_semantics<parallel>, #tpu.dimension_semantics<parallel>], iteration_bounds = array<i64: 1, 1>, scalar_prefetch = 0 : i64, scratch_operands = 0 : i64, tpu.core_type = #tpu.core_type<tc>, window_params = [{transform_indices = @transform_0, window_bounds = array<i64: 8, 2, 32>}, {transform_indices = @transform_1, window_bounds = array<i64: 8, 1, 32>}, {transform_indices = @transform_2, window_bounds = array<i64: 8, 2, 32>}]} {
    %c0 = arith.constant 0 : index
    %c0_0 = arith.constant 0 : index
    %c0_1 = arith.constant 0 : index
    %0 = vector.load %arg2[%c0, %c0_0, %c0_1] : memref<8x2x32xf32, #tpu.memory_space<vmem>>, vector<8x2x32xf32>
    %c0_2 = arith.constant 0 : index
    %c0_3 = arith.constant 0 : index
    %c0_4 = arith.constant 0 : index
    %1 = vector.load %arg3[%c0_2, %c0_3, %c0_4] : memref<8x1x32xf32, #tpu.memory_space<vmem>>, vector<8x1x32xf32>
    %2 = vector.broadcast %1 : vector<8x1x32xf32> to vector<8x2x32xf32>
    %3 = arith.addf %0, %2 : vector<8x2x32xf32>
    %c0_5 = arith.constant 0 : index
    %c0_6 = arith.constant 0 : index
    %c0_7 = arith.constant 0 : index
    %4 = vector.load %arg4[%c0_5, %c0_6, %c0_7] : memref<8x2x32xf32, #tpu.memory_space<vmem>>, vector<8x2x32xf32>
    tpu.vector_store %arg4[%c0_5, %c0_6, %c0_7], %3 {strides = array<i32>} : memref<8x2x32xf32, #tpu.memory_space<vmem>>, vector<8x2x32xf32>,
    return
  }
  func.func @transform_0(%arg0: i32, %arg1: i32) -> (i32, i32, i32) {
    %c0_i32 = arith.constant 0 : i32
    %c0_i32_0 = arith.constant 0 : i32
    return %arg0, %arg1, %c0_i32 : i32, i32, i32
  }
  func.func @transform_1(%arg0: i32, %arg1: i32) -> (i32, i32, i32) {
    %c0_i32 = arith.constant 0 : i32
    %c0_i32_0 = arith.constant 0 : i32
    %c0_i32_1 = arith.constant 0 : i32
    return %arg0, %c0_i32, %c0_i32_0 : i32, i32, i32
  }
  func.func @transform_2(%arg0: i32, %arg1: i32) -> (i32, i32, i32) {
    %c0_i32 = arith.constant 0 : i32
    %c0_i32_0 = arith.constant 0 : i32
    return %arg0, %arg1, %c0_i32 : i32, i32, i32
  }
}

</mosaic_0001>

<bundles_post_ra>
// kernel: tpu_custom_call.1
= control target key start
LH: loop header
LB: loop body
LE: loop exit
PB: predicated region body
PF: predicated region fallthrough
CT: control target
= control target key end

     0   :  { %vm84_vm0 = vcmask 254976   ;;  %s219_s0 = inlined_call_operand.vmem [shape: f32[8,2,32], index: 0, kind: input, shape index: {}]   ;;  %s220_s1 = inlined_call_operand.vmem [shape: f32[500,1,32], index: 1, kind: input, shape index: {}]   ;;  %s221_s2 = inlined_call_operand.hbm [shape: f32[8,2,32], index: 2, kind: output, shape index: {}]  }
   0x1   :  { %v12_v0 = vld [vmem:[%s219_s0] sm:$0x3]  ;;  %v13_v3 = vld [vmem:[%s219_s0 + $0x2] sm:$0x3]  ;;  %v14_v5 = vld [vmem:[%s219_s0 + $0x4] sm:$0x3] }
   0x2   :  { %v109_v1 = vld [vmem:[%s220_s1] ss:$0 sm:$0xff]  ;;  %v110_v4 = vld [vmem:[%s220_s1 + $0x1] ss:$0 sm:$0xff]  ;;  %v111_v7 = vld [vmem:[%s220_s1 + $0x2] ss:$0 sm:$0xff] }
   0x3   :  { %v76_v2 = vadd.f32 %v109_v1, %v12_v0  ;;  %v77_v6 = vadd.f32 %v110_v4, %v13_v3  ;;  %v15_v8 = vld [vmem:[%s219_s0 + $0x6] sm:$0x3]  ;;  %v112_v9 = vld [vmem:[%s220_s1 + $0x3] ss:$0 sm:$0xff]  ;;  %v78_v10 = vadd.f32 %v111_v7, %v14_v5  ;;  %v16_v12 = vld [vmem:[%s219_s0 + $0x8] sm:$0x3] }
   0x4   :  { %v79_v11 = vadd.f32 %v112_v9, %v15_v8  ;;  %v113_v13 = vld [vmem:[%s220_s1 + $0x4] ss:$0 sm:$0xff]  ;;  %v17_v14 = vld [vmem:[%s219_s0 + $0xa] sm:$0x3]  ;;  %v114_v16 = vld [vmem:[%s220_s1 + $0x5] ss:$0 sm:$0xff] }
   0x5   :  { %85 = vst.msk [vmem:[#allocation2] sm:$0x3] %vm84_vm0, %v76_v2  ;;  %86 = vst.msk [vmem:[#allocation2 + $0x2] sm:$0x3] %vm84_vm0, %v77_v6  ;;  %v80_v15 = vadd.f32 %v113_v13, %v16_v12  ;;  %v18_v17 = vld [vmem:[%s219_s0 + $0xc] sm:$0x3]  ;;  %v81_v19 = vadd.f32 %v114_v16, %v17_v14 }
   0x6   :  { %v115_v18 = vld [vmem:[%s220_s1 + $0x6] ss:$0 sm:$0xff]  ;;  %87 = vst.msk [vmem:[#allocation2 + $0x4] sm:$0x3] %vm84_vm0, %v78_v10  ;;  %88 = vst.msk [vmem:[#allocation2 + $0x6] sm:$0x3] %vm84_vm0, %v79_v11 }
   0x7   :  { %v82_v20 = vadd.f32 %v115_v18, %v18_v17  ;;  %v19_v21 = vld [vmem:[%s219_s0 + $0xe] sm:$0x3]  ;;  %v116_v22 = vld [vmem:[%s220_s1 + $0x7] ss:$0 sm:$0xff] }
   0x8   :  { %7 = vsyncpa [#allocation3], 0  ;;  %89 = vst.msk [vmem:[#allocation2 + $0x8] sm:$0x3] %vm84_vm0, %v80_v15  ;;  %v83_v23 = vadd.f32 %v116_v22, %v19_v21  ;;  %s142_s13 = smov [#allocation2]  }
   0x9   :  { %s98_s14 = sshll.u32 %s142_s13, 4  ;;  %90 = vst.msk [vmem:[#allocation2 + $0xa] sm:$0x3] %vm84_vm0, %v81_v19  ;;  %91 = vst.msk [vmem:[#allocation2 + $0xc] sm:$0x3] %vm84_vm0, %v82_v20  ;;  %s99_s14 = int_to_ptr.vmem [resolvable:$true] %s98_s14 }
   0xa   :  { %92 = vst.msk [vmem:[#allocation2 + $0xe] sm:$0x3] %vm84_vm0, %v83_v23  ;;  %s120_s15 = scalar_lea.vmem %s99_s14, 256  ;;  %p125_p1 = scmp.lt.s32.totalorder %s99_s14, %s99_s14 }
   0xb   :  { %p121_p0 = scmp.ne.s32.totalorder %s99_s14, %s120_s15  ;;  %p126_p2 = scmp.lt.s32.totalorder %s120_s15, %s120_s15 }
   0xd   :  { %p127_p3 = por %p126_p2, %p125_p1 }
   0xf   :  { %p128_p4 = pnand %p127_p3, %p121_p0 }
  0x11   :  { %131 = shalt.err (!%p128_p4)
}
  0x12   :  { %s143_s0 = smov 32   ;;  %s144_s1 = smov 2  }
  0x13   :  { %104 = dma.vmem_to_hbm [thread:$0]  %s99_s14, 256, %s221_s2, [#allocation3], %s143_s0, %s143_s0, %s144_s1  }
  0x14   :  { %140 = dma.done.wait [#allocation3], 256  }
  0x15   :  { %141 = vsyncadd [#allocation3], 4294967040 }
  0x16   :  { %108 = vsyncpa [#allocation3], 1 }

</bundles_post_ra>
